<compile_context>
chip_gen: v7x
topology: tpu7x:2x2x1
jax: 0.10.0
libtpu: 0.0.40
codegen_flags: <defaults>
</compile_context>

<pallas_src>
import functools

import jax
import jax.numpy as jnp
from jax.experimental import pallas as pl
from jax.experimental.pallas import tpu as pltpu


def _sampler_kernel(logit_ref, u24_ref, out_ref):
    # prob = sigmoid(logit), computed in f32 like torch.sigmoid on f32 input.
    prob = jax.nn.sigmoid(logit_ref[...].astype(jnp.float32))
    # u24 holds integers in [0, 2^24); convert to a uniform in [0, 1).
    uniform = u24_ref[...].astype(jnp.float32) * (1.0 / (1 << 24))
    # Bernoulli sample: 1.0 with probability `prob`, else 0.0
    # (torch Bernoulli.sample returns floats of the probs' dtype).
    out_ref[...] = (uniform < prob).astype(out_ref.dtype)


def _round_up(x: int, m: int) -> int:
    return ((x + m - 1) // m) * m


def sampler_forward(
    logit: jax.Array,
    key: jax.Array,
    *,
    target_rows: int = 512,
    target_cols: int = 1024,
) -> jax.Array:
    """Equivalent of Sampler.forward(logit) from the PyTorch module."""
    assert logit.ndim == 2, "expected [batch, features] layout"
    B, N = logit.shape
    out_dtype = logit.dtype

    # ---- choose large, (8,128)-aligned tiles (memory-bound kernel) ----------
    bc = min(target_cols, _round_up(N, 128))
    br = min(target_rows, _round_up(B, 8))
    Bp, Np = _round_up(B, br), _round_up(N, bc)

    # ---- random bits for the Bernoulli draw (generated outside the kernel) --
    # 24-bit uniforms as int32: (bits >> 8) in [0, 2^24).
    bits = jax.random.bits(key, (Bp, Np), dtype=jnp.uint32)
    u24 = (bits >> jnp.uint32(8)).astype(jnp.int32)

    x = logit
    if (Bp, Np) != (B, N):
        x = jnp.pad(x, ((0, Bp - B), (0, Np - N)))

    grid = (Bp // br, Np // bc)

    # ---- VMEM budget: (logit + u24 + out) x 2 double-buffers, with headroom --
    tile_bytes = br * bc * (x.dtype.itemsize + u24.dtype.itemsize
                            + jnp.dtype(out_dtype).itemsize)
    needed = 2 * tile_bytes
    vmem_limit = int(min(64 * 1024 * 1024, max(32 * 1024 * 1024, 2 * needed)))

    out = pl.pallas_call(
        _sampler_kernel,
        out_shape=jax.ShapeDtypeStruct((Bp, Np), out_dtype),
        grid=grid,
        in_specs=[
            pl.BlockSpec((br, bc), lambda i, j: (i, j)),
            pl.BlockSpec((br, bc), lambda i, j: (i, j)),
        ],
        out_specs=pl.BlockSpec((br, bc), lambda i, j: (i, j)),
        compiler_params=pltpu.CompilerParams(
            dimension_semantics=("parallel", "parallel"),
            vmem_limit_bytes=vmem_limit,
        ),
    )(x, u24)

    if (Bp, Np) != (B, N):
        out = out[:B, :N]
    return out


if __name__ == "__main__":
    # Sampler(input_dim) has no parameters; input_dim is unused in forward.
    key = jax.random.PRNGKey(0)
    logit_key, sample_key = jax.random.split(key)

    batch, features = 16, 256
    logit = jax.random.normal(logit_key, (batch, features), dtype=jnp.float32)

    sample = sampler_forward(logit, sample_key)
    jax.block_until_ready(sample)

    # Sanity checks: output is {0, 1}-valued, same shape/dtype as logit.
    assert sample.shape == logit.shape
    assert sample.dtype == logit.dtype
    assert bool(jnp.all((sample == 0.0) | (sample == 1.0)))

    print("KERNEL_OK")
</pallas_src>

<mosaic_0001>
module attributes {stable_mosaic.version = 11 : i64} {
  func.func @_sampler_kernel(%arg0: i32, %arg1: i32, %arg2: memref<16x256xf32, #tpu.memory_space<vmem>>, %arg3: memref<16x256xi32, #tpu.memory_space<vmem>>, %arg4: memref<16x256xf32, #tpu.memory_space<vmem>>) attributes {dimension_semantics = [#tpu.dimension_semantics<parallel>, #tpu.dimension_semantics<parallel>], iteration_bounds = array<i64: 1, 1>, scalar_prefetch = 0 : i64, scratch_operands = 0 : i64, tpu.core_type = #tpu.core_type<tc>, window_params = [{transform_indices = @transform_0, window_bounds = array<i64: 16, 256>}, {transform_indices = @transform_1, window_bounds = array<i64: 16, 256>}, {transform_indices = @transform_2, window_bounds = array<i64: 16, 256>}]} {
    %c0 = arith.constant 0 : index
    %c0_0 = arith.constant 0 : index
    %0 = vector.load %arg2[%c0, %c0_0] : memref<16x256xf32, #tpu.memory_space<vmem>>, vector<16x256xf32>
    %1 = arith.negf %0 : vector<16x256xf32>
    %2 = math.exp %1 : vector<16x256xf32>
    %cst = arith.constant 1.000000e+00 : f32
    %3 = vector.broadcast %cst : f32 to vector<16x256xf32>
    %4 = arith.addf %3, %2 : vector<16x256xf32>
    %5 = arith.divf %3, %4 : vector<16x256xf32>
    %c0_1 = arith.constant 0 : index
    %c0_2 = arith.constant 0 : index
    %6 = vector.load %arg3[%c0_1, %c0_2] : memref<16x256xi32, #tpu.memory_space<vmem>>, vector<16x256xi32>
    %7 = arith.sitofp %6 : vector<16x256xi32> to vector<16x256xf32>
    %cst_3 = arith.constant 5.96046448E-8 : f32
    %8 = vector.broadcast %cst_3 : f32 to vector<16x256xf32>
    %9 = arith.mulf %7, %8 : vector<16x256xf32>
    %10 = arith.cmpf olt, %9, %5 : vector<16x256xf32>
    %11 = arith.extui %10 : vector<16x256xi1> to vector<16x256xi32>
    %12 = arith.sitofp %11 : vector<16x256xi32> to vector<16x256xf32>
    %c0_4 = arith.constant 0 : index
    %c0_5 = arith.constant 0 : index
    %13 = vector.load %arg4[%c0_4, %c0_5] : memref<16x256xf32, #tpu.memory_space<vmem>>, vector<16x256xf32>
    tpu.vector_store %arg4[%c0_4, %c0_5], %12 {strides = array<i32>} : memref<16x256xf32, #tpu.memory_space<vmem>>, vector<16x256xf32>,
    return
  }
  func.func @transform_0(%arg0: i32, %arg1: i32) -> (i32, i32) {
    %c0_i32 = arith.constant 0 : i32
    return %arg0, %arg1 : i32, i32
  }
  func.func @transform_1(%arg0: i32, %arg1: i32) -> (i32, i32) {
    %c0_i32 = arith.constant 0 : i32
    return %arg0, %arg1 : i32, i32
  }
  func.func @transform_2(%arg0: i32, %arg1: i32) -> (i32, i32) {
    %c0_i32 = arith.constant 0 : i32
    return %arg0, %arg1 : i32, i32
  }
}

</mosaic_0001>

<bundles_post_ra>
// kernel: tpu_custom_call.1
= control target key start
LH: loop header
LB: loop body
LE: loop exit
PB: predicated region body
PF: predicated region fallthrough
CT: control target
= control target key end

     0   :  { %7 = vsyncpa [#allocation3], 0  ;;  %s282_s0 = inlined_call_operand.hbm [shape: f32[16,256], index: 0, kind: input, shape index: {}]   ;;  %s283_s1 = inlined_call_operand.hbm [shape: s32[16,256], index: 1, kind: input, shape index: {}]   ;;  %s284_s2 = inlined_call_operand.hbm [shape: f32[16,256], index: 2, kind: output, shape index: {}]  }
   0x1   :  { %8 = vsyncpa [#allocation6], 0 }
   0x2   :  { %9 = vsyncpa [#allocation4], 0  ;;  %s216_s9 = smov [#allocation2]   ;;  %s144_s13 = scalar_lea.hbm %s282_s0, 512 }
   0x3   :  { %s15_s10 = sshll.u32 %s216_s9, 4  ;;  %p145_p0 = scmp.ne.s32.totalorder %s282_s0, %s144_s13  ;;  %s16_s10 = int_to_ptr.vmem [resolvable:$true] %s15_s10 }
   0x4   :  { %p148_p1 = scmp.lt.u32.totalorder %s144_s13, %s282_s0 }
   0x6   :  { %p150_p2 = pnand %p148_p1, %p145_p0 }
   0x8   :  { %153 = shalt.err (!%p150_p2)
}
   0x9   :  { %s154_s18 = scalar_lea.vmem %s16_s10, 512  ;;  %p159_p4 = scmp.lt.s32.totalorder %s16_s10, %s16_s10 }
   0xa   :  { %p155_p3 = scmp.ne.s32.totalorder %s16_s10, %s154_s18  ;;  %p160_p5 = scmp.lt.s32.totalorder %s154_s18, %s154_s18 }
   0xc   :  { %p161_p6 = por %p160_p5, %p159_p4 }
   0xe   :  { %p162_p7 = pnand %p161_p6, %p155_p3 }
  0x10   :  { %165 = shalt.err (!%p162_p7)
}
  0x11   :  { %s217_s19 = smov 256   ;;  %s218_s20 = smov 16  }
  0x12   :  { %21 = dma.hbm_to_vmem [thread:$0]  %s282_s0, 512, %s16_s10, [#allocation3], %s217_s19, %s217_s19, %s218_s20  }
  0x13   :  { %s219_s23 = smov [#allocation5]   ;;  %s166_s27 = scalar_lea.hbm %s283_s1, 512 }
  0x14   :  { %s27_s24 = sshll.u32 %s219_s23, 4  ;;  %p167_p8 = scmp.ne.s32.totalorder %s283_s1, %s166_s27  ;;  %s28_s24 = int_to_ptr.vmem [resolvable:$true] %s27_s24 }
  0x15   :  { %p170_p9 = scmp.lt.u32.totalorder %s166_s27, %s283_s1 }
  0x17   :  { %p172_p10 = pnand %p170_p9, %p167_p8 }
  0x19   :  { %175 = shalt.err (!%p172_p10)
}
  0x1a   :  { %s176_s4 = scalar_lea.vmem %s28_s24, 512  ;;  %p181_p12 = scmp.lt.s32.totalorder %s28_s24, %s28_s24 }
  0x1b   :  { %p177_p11 = scmp.ne.s32.totalorder %s28_s24, %s176_s4  ;;  %p182_p13 = scmp.lt.s32.totalorder %s176_s4, %s176_s4 }
  0x1d   :  { %p183_p0 = por %p182_p13, %p181_p12 }
  0x1f   :  { %p184_p1 = pnand %p183_p0, %p177_p11 }
  0x21   :  { %187 = shalt.err (!%p184_p1)
}
  0x22   :  { %33 = dma.hbm_to_vmem [thread:$0]  %s283_s1, 512, %s28_s24, [#allocation6], %s217_s19, %s217_s19, %s218_s20  }
  0x23   :  { %210 = dma.done.wait [#allocation3], 512  }
  0x24   :  { %211 = vsyncadd [#allocation3], 4294966784 }
  0x25   :  { %212 = dma.done.wait [#allocation6], 512  }
  0x26   :  { %213 = vsyncadd [#allocation6], 4294966784  ;;  %v40_v0 = vld [vmem:[#allocation2] sm:$0xff]  ;;  %v41_v1 = vld [vmem:[#allocation2 + $0x8] sm:$0xff]  ;;  %s220_s1 = smov [#allocation7]   ;;  %v221_v31 = vmov 0.0  }
  0x27   :  { %v114_v2 = vmul.f32 -1.442695, %v40_v0  ;;  %v115_v3 = vmul.f32 -1.442695, %v41_v1  ;;  %v42_v4 = vld [vmem:[#allocation2 + $0x10] sm:$0xff]  ;;  %v43_v6 = vld [vmem:[#allocation2 + $0x18] sm:$0xff] }
  0x28   :  { %v116_v5 = vmul.f32 -1.442695, %v42_v4  ;;  %v117_v7 = vmul.f32 -1.442695, %v43_v6  ;;  %v68_v14 = vld [vmem:[#allocation5] sm:$0xff]  ;;  %v69_v16 = vld [vmem:[#allocation5 + $0x8] sm:$0xff] }
  0x29   :  { %128 = vpow2.f32 %v114_v2  ;;  %v70_v18 = vld [vmem:[#allocation5 + $0x10] sm:$0xff]  ;;  %v72_v19 = vcvt.s32.f32 %v68_v14  ;;  %v71_v20 = vld [vmem:[#allocation5 + $0x18] sm:$0xff]  ;;  %v73_v21 = vcvt.s32.f32 %v69_v16  ;;  %s101_s6 = sshll.u32 %s220_s1, 4  ;;  %s102_s6 = int_to_ptr.vmem [resolvable:$true] %s101_s6 }
  0x2a   :  { %130 = vpow2.f32 %v115_v3  ;;  %v74_v22 = vcvt.s32.f32 %v70_v18  ;;  %v75_v23 = vcvt.s32.f32 %v71_v20  ;;  %s188_s7 = scalar_lea.vmem %s102_s6, 512  ;;  %p193_p3 = scmp.lt.s32.totalorder %s102_s6, %s102_s6 }
  0x2b   :  { %132 = vpow2.f32 %v116_v5  ;;  %v76_v24 = vmul.f32 5.9604645e-08, %v72_v19  ;;  %v77_v25 = vmul.f32 5.9604645e-08, %v73_v21  ;;  %p189_p2 = scmp.ne.s32.totalorder %s102_s6, %s188_s7  ;;  %p194_p4 = scmp.lt.s32.totalorder %s188_s7, %s188_s7 }
  0x2c   :  { %134 = vpow2.f32 %v117_v7  ;;  %v78_v26 = vmul.f32 5.9604645e-08, %v74_v22  ;;  %v79_v28 = vmul.f32 5.9604645e-08, %v75_v23 }
  0x2d   :  { %p195_p5 = por %p194_p4, %p193_p3 }
  0x2f   :  { %p196_p6 = pnand %p195_p5, %p189_p2 }
  0x33   :  { %v129_v8 = vpop.eup %128 }
  0x34   :  { %v131_v9 = vpop.eup %130  ;;  %v56_v10 = vadd.f32 1.0, %v129_v8 }
  0x35   :  { %v133_v11 = vpop.eup %132  ;;  %v57_v12 = vadd.f32 1.0, %v131_v9 }
  0x36   :  { %v135_v13 = vpop.eup %134  ;;  %136 = vrcp.f32 %v56_v10  ;;  %v58_v15 = vadd.f32 1.0, %v133_v11 }
  0x37   :  { %138 = vrcp.f32 %v57_v12  ;;  %v59_v17 = vadd.f32 1.0, %v135_v13 }
  0x38   :  { %140 = vrcp.f32 %v58_v15 }
  0x39   :  { %142 = vrcp.f32 %v59_v17 }
  0x40   :  { %v137_v27 = vpop.eup %136 }
  0x41   :  { %v139_v29 = vpop.eup %138  ;;  %vm80_vm0 = vcmp.lt.f32.partialorder %v76_v24, %v137_v27 }
  0x42   :  { %v141_v30 = vpop.eup %140  ;;  %v118_v32 = vsel %vm80_vm0, 1.0, %v221_v31  ;;  %vm81_vm1 = vcmp.lt.f32.partialorder %v77_v25, %v139_v29 }
  0x43   :  { %v143_v33 = vpop.eup %142  ;;  %92 = vst [vmem:[#allocation7] sm:$0xff] %v118_v32  ;;  %v119_v34 = vsel %vm81_vm1, 1.0, %v221_v31  ;;  %vm82_vm2 = vcmp.lt.f32.partialorder %v78_v26, %v141_v30 }
  0x44   :  { %93 = vst [vmem:[#allocation7 + $0x8] sm:$0xff] %v119_v34  ;;  %v120_v35 = vsel %vm82_vm2, 1.0, %v221_v31  ;;  %vm83_vm3 = vcmp.lt.f32.partialorder %v79_v28, %v143_v33 }
  0x45   :  { %94 = vst [vmem:[#allocation7 + $0x10] sm:$0xff] %v120_v35  ;;  %v121_v36 = vsel %vm83_vm3, 1.0, %v221_v31 }
  0x46   :  { %95 = vst [vmem:[#allocation7 + $0x18] sm:$0xff] %v121_v36 }
  0x47   :  { %199 = shalt.err (!%p196_p6)
}
  0x48   :  { %s200_s10 = scalar_lea.hbm %s284_s2, 512 }
  0x49   :  { %p201_p7 = scmp.ne.s32.totalorder %s284_s2, %s200_s10  ;;  %p204_p8 = scmp.lt.u32.totalorder %s200_s10, %s284_s2 }
  0x4b   :  { %p206_p9 = pnand %p204_p8, %p201_p7 }
  0x4d   :  { %209 = shalt.err (!%p206_p9)
}
  0x4e   :  { %107 = dma.vmem_to_hbm [thread:$0]  %s102_s6, 512, %s284_s2, [#allocation4], %s217_s19, %s217_s19, %s218_s20  }
  0x4f   :  { %214 = dma.done.wait [#allocation4], 512  }
  0x50   :  { %215 = vsyncadd [#allocation4], 4294966784 }
  0x51   :  { %111 = vsyncpa [#allocation3], 1 }
  0x52   :  { %112 = vsyncpa [#allocation6], 1 }
  0x53   :  { %113 = vsyncpa [#allocation4], 1 }

</bundles_post_ra>
